<compile_context>
chip_gen: v7x
topology: tpu7x:2x2x1
jax: 0.10.0
libtpu: 0.0.40
codegen_flags: <defaults>
</compile_context>

<pallas_src>
import functools

import jax
import jax.numpy as jnp
from jax.experimental import pallas as pl
from jax.experimental.pallas import tpu as pltpu

NUM_INPUTS = 2                                # K of the Linear layer
NUM_OUTPUTS = 4                               # N of the Linear layer
BATCH_PER_ROW = 128 // NUM_INPUTS             # 64 batch elements per 128-lane input row
IN_LANES = 128                                # input slab lane width
OUT_LANES = BATCH_PER_ROW * NUM_OUTPUTS       # 256: output slab lane width (lane-dense)


def _round_up(n: int, m: int) -> int:
    return ((n + m - 1) // m) * m


def _cdiv(a: int, b: int) -> int:
    return (a + b - 1) // b


def linear_kernel(m_ref, b_ref, x_ref, o_ref):
    """One batch tile of y = x @ W^T + b, entirely in the native row-major layout.

    x_ref: (Rt, 128)  f32  - Rt rows, each 64 interleaved (x0, x1) batch pairs.
    m_ref: (128, 256) f32  - kron(I_64, W^T): block-diagonal replication of W^T, so the
                             matmul de-interleaves the lane pairs AND applies the 2x4
                             linear map straight into row-major output lanes.
    b_ref: (1, 256)   f32  - bias tiled 64x, already in output-lane order.
    o_ref: (Rt, 256)  f32  - Rt rows, each 64 interleaved (y0..y3) quads.
    """
    o_ref[...] = (
        jnp.dot(x_ref[...], m_ref[...], preferred_element_type=jnp.float32)
        + b_ref[...]
    ).astype(o_ref.dtype)


@functools.partial(jax.jit, static_argnames=("tb",))
def linear_net_forward(x, weight, bias, tb: int = 131072):
    """LinearNet forward: y = flatten(x) @ W^T + b, returns (B, NUM_OUTPUTS) float32.

    x:      (B, *) -> flattened to (B, NUM_INPUTS)   (mirrors x.view(x.shape[0], -1))
    weight: (NUM_OUTPUTS, NUM_INPUTS)  torch layout
    bias:   (NUM_OUTPUTS,)
    tb:     target batch elements per grid step (multiple of 512 recommended).
    """
    B = x.shape[0]
    x2d = x.reshape(B, -1).astype(jnp.float32)          # glue: flatten (plain JAX)
    assert x2d.shape[1] == NUM_INPUTS, "flattened feature dim must equal num_inputs"

    # Pad only when the batch is ragged w.r.t. the 64-element row granularity (or tiny).
    # Padded rows evaluate to `bias` and are sliced off below; for B % 64 == 0 and
    # B >= 512 this branch is skipped and the whole wrapper is free bitcast reshapes.
    b_pad = max(_round_up(B, BATCH_PER_ROW), 8 * BATCH_PER_ROW)
    if b_pad != B:
        x2d = jnp.pad(x2d, ((0, b_pad - B), (0, 0)))

    rows = b_pad // BATCH_PER_ROW                       # height of the input/output slabs
    x_slab = x2d.reshape(rows, IN_LANES)                # free row-major reshape

    # Tile sizing: rows per tile is a multiple of 8 (sublane rule), large enough to
    # amortize per-step overhead, capped so (a) VMEM stays small on v7x and (b) there
    # are >= 2 tiles whenever possible so both v7x TensorCores get work.
    max_rows_tile = max(8, min(tb, 1 << 19) // BATCH_PER_ROW)   # cap keeps VMEM < ~25 MiB
    rows_tile = min(_round_up(max_rows_tile, 8), _round_up(_cdiv(rows, 2), 8))
    n_tiles = _cdiv(rows, rows_tile)                    # ragged last tile handled by Pallas

    # Tiny O(1)-in-B weight repack: M = kron(I_64, W^T); bias tiled into output-lane order.
    w_t = weight.astype(jnp.float32).T                                      # (2, 4)
    m = jnp.kron(jnp.eye(BATCH_PER_ROW, dtype=jnp.float32), w_t)            # (128, 256)
    b_tile = jnp.tile(bias.astype(jnp.float32), BATCH_PER_ROW).reshape(1, OUT_LANES)

    out_slab = pl.pallas_call(
        linear_kernel,
        out_shape=jax.ShapeDtypeStruct((rows, OUT_LANES), jnp.float32),
        grid=(n_tiles,),
        in_specs=[
            pl.BlockSpec((IN_LANES, OUT_LANES), lambda i: (0, 0)),   # M: fetched once, resident
            pl.BlockSpec((1, OUT_LANES), lambda i: (0, 0)),          # bias: resident
            pl.BlockSpec((rows_tile, IN_LANES), lambda i: (i, 0)),   # x tile (lane-dense)
        ],
        out_specs=pl.BlockSpec((rows_tile, OUT_LANES), lambda i: (i, 0)),
        compiler_params=pltpu.CompilerParams(
            dimension_semantics=("parallel",),          # shard batch tiles across TCs (v7x)
            vmem_limit_bytes=32 * 1024 * 1024,          # > double-buffered footprint, safe on v5e..v7x
        ),
        cost_estimate=pl.CostEstimate(
            flops=2 * NUM_INPUTS * NUM_OUTPUTS * b_pad,                   # useful flops
            transcendentals=0,
            bytes_accessed=4 * b_pad * (NUM_INPUTS + NUM_OUTPUTS),        # ~24*B bytes
        ),
    )(m, b_tile, x_slab)

    y = out_slab.reshape(b_pad, NUM_OUTPUTS)            # free row-major reshape
    return y if b_pad == B else y[:B]


if __name__ == "__main__":
    key = jax.random.PRNGKey(0)
    kx, kw, kb, kx2, kx3 = jax.random.split(key, 5)

    # Deterministic parameter init (mimic torch.nn.Linear default: U(-1/sqrt(in), 1/sqrt(in))).
    bound = 1.0 / jnp.sqrt(jnp.float32(NUM_INPUTS))
    weight = jax.random.uniform(kw, (NUM_OUTPUTS, NUM_INPUTS),
                                minval=-bound, maxval=bound, dtype=jnp.float32)
    bias = jax.random.uniform(kb, (NUM_OUTPUTS,),
                              minval=-bound, maxval=bound, dtype=jnp.float32)

    # 1) Tiny batch (exercises the pad-to-minimum path, single tile).
    batch = 8
    x = jax.random.normal(kx, (batch, NUM_INPUTS), dtype=jnp.float32)
    y = jax.block_until_ready(linear_net_forward(x, weight, bias))
    y_ref = x @ weight.T + bias
    assert y.shape == (batch, NUM_OUTPUTS)
    assert jnp.allclose(y, y_ref, atol=1e-5, rtol=1e-5)

    # 2) Batch divisible by 64 (zero-copy reshape path) with a small tile -> 4 grid steps.
    batch2 = 4096
    x2 = jax.random.normal(kx2, (batch2, NUM_INPUTS), dtype=jnp.float32)
    y2 = jax.block_until_ready(linear_net_forward(x2, weight, bias, tb=1024))
    y2_ref = x2 @ weight.T + bias
    assert y2.shape == (batch2, NUM_OUTPUTS)
    assert jnp.allclose(y2, y2_ref, atol=1e-5, rtol=1e-5)

    # 3) Ragged batch (not a multiple of 64) AND ragged last grid tile.
    batch3 = 1200
    x3 = jax.random.normal(kx3, (batch3, NUM_INPUTS), dtype=jnp.float32)
    y3 = jax.block_until_ready(linear_net_forward(x3, weight, bias, tb=512))
    y3_ref = x3 @ weight.T + bias
    assert y3.shape == (batch3, NUM_OUTPUTS)
    assert jnp.allclose(y3, y3_ref, atol=1e-5, rtol=1e-5)

    print("KERNEL_OK")
</pallas_src>

<mosaic_0001>
module attributes {stable_mosaic.version = 11 : i64} {
  func.func @linear_kernel(%arg0: i32, %arg1: memref<128x256xf32, #tpu.memory_space<vmem>>, %arg2: memref<1x256xf32, #tpu.memory_space<vmem>>, %arg3: memref<8x128xf32, #tpu.memory_space<vmem>>, %arg4: memref<8x256xf32, #tpu.memory_space<vmem>>) attributes {dimension_semantics = [#tpu.dimension_semantics<parallel>], iteration_bounds = array<i64: 1>, scalar_prefetch = 0 : i64, scratch_operands = 0 : i64, tpu.core_type = #tpu.core_type<tc>, window_params = [{pipeline_mode = #tpu.pipeline_mode<synchronous>, transform_indices = @transform_0, window_bounds = array<i64: 128, 256>}, {pipeline_mode = #tpu.pipeline_mode<synchronous>, transform_indices = @transform_1, window_bounds = array<i64: 1, 256>}, {transform_indices = @transform_2, window_bounds = array<i64: 8, 128>}, {transform_indices = @transform_3, window_bounds = array<i64: 8, 256>}]} {
    %c0 = arith.constant 0 : index
    %c0_0 = arith.constant 0 : index
    %0 = vector.load %arg3[%c0, %c0_0] : memref<8x128xf32, #tpu.memory_space<vmem>>, vector<8x128xf32>
    %c0_1 = arith.constant 0 : index
    %c0_2 = arith.constant 0 : index
    %1 = vector.load %arg1[%c0_1, %c0_2] : memref<128x256xf32, #tpu.memory_space<vmem>>, vector<128x256xf32>
    %cst = arith.constant dense<0.000000e+00> : vector<8x256xf32>
    %2 = tpu.matmul %0, %1, %cst {dimension_numbers = #tpu.dot_dimension_numbers<[1], [0], [0], [1], [0, 0, 1, 1], [], []>} : vector<8x128xf32>, vector<128x256xf32>, vector<8x256xf32> -> vector<8x256xf32>
    %c0_3 = arith.constant 0 : index
    %c0_4 = arith.constant 0 : index
    %3 = vector.load %arg2[%c0_3, %c0_4] : memref<1x256xf32, #tpu.memory_space<vmem>>, vector<1x256xf32>
    %4 = vector.broadcast %3 : vector<1x256xf32> to vector<8x256xf32>
    %5 = arith.addf %2, %4 : vector<8x256xf32>
    %c0_5 = arith.constant 0 : index
    %c0_6 = arith.constant 0 : index
    %6 = vector.load %arg4[%c0_5, %c0_6] : memref<8x256xf32, #tpu.memory_space<vmem>>, vector<8x256xf32>
    tpu.vector_store %arg4[%c0_5, %c0_6], %5 {strides = array<i32>} : memref<8x256xf32, #tpu.memory_space<vmem>>, vector<8x256xf32>,
    return
  }
  func.func @transform_0(%arg0: i32) -> (i32, i32) {
    %c0_i32 = arith.constant 0 : i32
    %c0_i32_0 = arith.constant 0 : i32
    %c0_i32_1 = arith.constant 0 : i32
    return %c0_i32, %c0_i32_0 : i32, i32
  }
  func.func @transform_1(%arg0: i32) -> (i32, i32) {
    %c0_i32 = arith.constant 0 : i32
    %c0_i32_0 = arith.constant 0 : i32
    %c0_i32_1 = arith.constant 0 : i32
    return %c0_i32, %c0_i32_0 : i32, i32
  }
  func.func @transform_2(%arg0: i32) -> (i32, i32) {
    %c0_i32 = arith.constant 0 : i32
    %c0_i32_0 = arith.constant 0 : i32
    return %arg0, %c0_i32 : i32, i32
  }
  func.func @transform_3(%arg0: i32) -> (i32, i32) {
    %c0_i32 = arith.constant 0 : i32
    %c0_i32_0 = arith.constant 0 : i32
    return %arg0, %c0_i32 : i32, i32
  }
}

</mosaic_0001>

<bundles_post_ra>
// kernel: tile.8
= control target key start
LH: loop header
LB: loop body
LE: loop exit
PB: predicated region body
PF: predicated region fallthrough
CT: control target
= control target key end

     0   :  { %s64_s0 = inlined_call_operand.vmem [shape: f32[4], index: 0, kind: input, shape index: {}]   ;;  %s65_s1 = inlined_call_operand.vmem [shape: f32[64,4], index: 1, kind: output, shape index: {}]  }
   0x1   :  { %v4_v0 = vld [vmem:[%s64_s0] ss:$0 sm:$0xff] }
   0x2   :  { %5 = vst [vmem:[%s65_s1] sm:$0xff] %v4_v0  ;;  %20 = vst [vmem:[%s65_s1 + $0x8] sm:$0xff] %v4_v0 }
   0x3   :  { %21 = vst [vmem:[%s65_s1 + $0x10] sm:$0xff] %v4_v0  ;;  %22 = vst [vmem:[%s65_s1 + $0x18] sm:$0xff] %v4_v0 }
   0x4   :  { %23 = vst [vmem:[%s65_s1 + $0x20] sm:$0xff] %v4_v0  ;;  %24 = vst [vmem:[%s65_s1 + $0x28] sm:$0xff] %v4_v0 }
   0x5   :  { %25 = vst [vmem:[%s65_s1 + $0x30] sm:$0xff] %v4_v0  ;;  %26 = vst [vmem:[%s65_s1 + $0x38] sm:$0xff] %v4_v0 }

// kernel: tile.9
= control target key start
LH: loop header
LB: loop body
LE: loop exit
PB: predicated region body
PF: predicated region fallthrough
CT: control target
= control target key end

     0   :  { %vm5_vm0 = vcmask 1041409   ;;  %s425_s14 = smov 124   ;;  %s426_s21 = smov 116   ;;  %vm7_vm1 = vcmask 31744   ;;  %vm17_vm2 = vcmask 1048544   ;;  %vm27_vm3 = vcmask 1015744   ;;  %s696_s0 = inlined_call_operand.vmem [shape: f32[64,4], index: 0, kind: input, shape index: {}]   ;;  %s697_s1 = inlined_call_operand.vmem [shape: f32[1,256], index: 1, kind: output, shape index: {}]  }
   0x1   :  { %v331_v0 = vld [vmem:[%s696_s0 + $0x1f] sm:$0x1]   ;;  %v335_v3 = vld [vmem:[%s696_s0 + $0x1d] sm:$0x1]   ;;  %v333_v6 = vld [vmem:[%s696_s0 + $0x1e] sm:$0x1]  }
   0x2   :  { %v332_v1 = vld [vmem:[%s696_s0 + $0x3e] sm:$0x2]   ;;  %v336_v4 = vld [vmem:[%s696_s0 + $0x3c] sm:$0x2]   ;;  %v334_v7 = vld [vmem:[%s696_s0 + $0x3d] sm:$0x2]  }
   0x3   :  { %v14_v2 = vsel %vm5_vm0, %v332_v1, %v331_v0  ;;  %v34_v5 = vsel %vm5_vm0, %v336_v4, %v335_v3  ;;  %v337_v8 = vld [vmem:[%s696_s0 + $0x1c] sm:$0x1]   ;;  %v24_v9 = vsel %vm5_vm0, %v334_v7, %v333_v6  ;;  %v339_v12 = vld [vmem:[%s696_s0 + $0x1b] sm:$0x1]   ;;  %v341_v14 = vld [vmem:[%s696_s0 + $0x1a] sm:$0x1]  }
   0x4   :  { %15 = vrot.lane.b32.xlu0 %v14_v2, %s425_s14  ;;  %35 = vrot.lane.b32.xlu1 %v34_v5, %s426_s21  ;;  %v338_v10 = vld [vmem:[%s696_s0 + $0x3b] sm:$0x2]   ;;  %v340_v13 = vld [vmem:[%s696_s0 + $0x3a] sm:$0x2]   ;;  %s427_s3 = smov 120   ;;  %s428_s4 = smov 112  }
   0x5   :  { %v44_v11 = vsel %vm5_vm0, %v338_v10, %v337_v8  ;;  %v342_v15 = vld [vmem:[%s696_s0 + $0x39] sm:$0x2]   ;;  %v54_v16 = vsel %vm5_vm0, %v340_v13, %v339_v12  ;;  %v343_v18 = vld [vmem:[%s696_s0 + $0x19] sm:$0x1]   ;;  %v345_v20 = vld [vmem:[%s696_s0 + $0x18] sm:$0x1]  }
   0x6   :  { %v64_v17 = vsel %vm5_vm0, %v342_v15, %v341_v14  ;;  %v344_v19 = vld [vmem:[%s696_s0 + $0x38] sm:$0x2]   ;;  %v346_v21 = vld [vmem:[%s696_s0 + $0x37] sm:$0x2]   ;;  %s429_s13 = smov 108   ;;  %s430_s14 = smov 104  }
   0x7   :  { %v74_v22 = vsel %vm5_vm0, %v344_v19, %v343_v18  ;;  %v84_v23 = vsel %vm5_vm0, %v346_v21, %v345_v20  ;;  %v347_v24 = vld [vmem:[%s696_s0 + $0x17] sm:$0x1]   ;;  %v349_v26 = vld [vmem:[%s696_s0 + $0x16] sm:$0x1]   ;;  %s431_s23 = smov 100   ;;  %s432_s24 = smov 96  }
   0x8   :  { %25 = vrot.lane.b32.xlu0 %v24_v9, %s427_s3  ;;  %45 = vrot.lane.b32.xlu1 %v44_v11, %s428_s4  ;;  %v348_v25 = vld [vmem:[%s696_s0 + $0x36] sm:$0x2]   ;;  %v350_v27 = vld [vmem:[%s696_s0 + $0x35] sm:$0x2]   ;;  %s433_s4 = smov 92   ;;  %s434_s5 = smov 88  }
   0x9   :  { %v94_v28 = vsel %vm5_vm0, %v348_v25, %v347_v24  ;;  %v104_v29 = vsel %vm5_vm0, %v350_v27, %v349_v26  ;;  %v351_v30 = vld [vmem:[%s696_s0 + $0x15] sm:$0x1]   ;;  %v353_v32 = vld [vmem:[%s696_s0 + $0x14] sm:$0x1]   ;;  %v355_v36 = vld [vmem:[%s696_s0 + $0x13] sm:$0x1]  }
   0xa   :  { %v352_v31 = vld [vmem:[%s696_s0 + $0x34] sm:$0x2]   ;;  %v354_v33 = vld [vmem:[%s696_s0 + $0x33] sm:$0x2]   ;;  %v356_v37 = vld [vmem:[%s696_s0 + $0x32] sm:$0x2]  }
   0xb   :  { %v114_v34 = vsel %vm5_vm0, %v352_v31, %v351_v30  ;;  %v124_v35 = vsel %vm5_vm0, %v354_v33, %v353_v32  ;;  %v357_v38 = vld [vmem:[%s696_s0 + $0x12] sm:$0x1]   ;;  %s436_s15 = smov 80   ;;  %v134_v40 = vsel %vm5_vm0, %v356_v37, %v355_v36  ;;  %v359_v42 = vld [vmem:[%s696_s0 + $0x11] sm:$0x1]   ;;  %s438_s29 = smov 72  }
   0xc   :  { %55 = vrot.lane.b32.xlu0 %v54_v16, %s429_s13  ;;  %65 = vrot.lane.b32.xlu1 %v64_v17, %s430_s14  ;;  %v358_v39 = vld [vmem:[%s696_s0 + $0x31] sm:$0x2]   ;;  %s435_s14 = smov 84   ;;  %v360_v43 = vld [vmem:[%s696_s0 + $0x30] sm:$0x2]   ;;  %s439_s9 = smov 68  }
   0xd   :  { %v144_v41 = vsel %vm5_vm0, %v358_v39, %v357_v38  ;;  %v361_v44 = vld [vmem:[%s696_s0 + $0x10] sm:$0x1]   ;;  %v2_v46 = vld [vmem:[%s696_s0] sm:$0x1]   ;;  %v154_v48 = vsel %vm5_vm0, %v360_v43, %v359_v42  ;;  %v363_v51 = vld [vmem:[%s696_s0 + $0xf] sm:$0x1]  }
   0xe   :  { %v362_v45 = vld [vmem:[%s696_s0 + $0x2f] sm:$0x2]   ;;  %v330_v47 = vld [vmem:[%s696_s0 + $0x1f] sm:$0x2]   ;;  %v364_v52 = vld [vmem:[%s696_s0 + $0x2e] sm:$0x2]  }
   0xf   :  { %v6_v49 = vsel %vm5_vm0, %v330_v47, %v2_v46  ;;  %v164_v50 = vsel %vm5_vm0, %v362_v45, %v361_v44  ;;  %v365_v53 = vld [vmem:[%s696_s0 + $0xe] sm:$0x1]   ;;  %s440_s10 = smov 64   ;;  %v174_v55 = vsel %vm5_vm0, %v364_v52, %v363_v51  ;;  %v367_v57 = vld [vmem:[%s696_s0 + $0xd] sm:$0x1]   ;;  %s441_s19 = smov 60  }
  0x10   :  { %75 = vrot.lane.b32.xlu0 %v74_v22, %s431_s23  ;;  %85 = vrot.lane.b32.xlu1 %v84_v23, %s432_s24  ;;  %s437_s24 = smov 76   ;;  %8 = vst.msk [vmem:[#allocation0] ss:$8 sm:$0x3] %vm7_vm1, %v6_v49   ;;  %v366_v54 = vld [vmem:[%s696_s0 + $0x2d] sm:$0x2]  }
  0x11   :  { %v184_v56 = vsel %vm5_vm0, %v366_v54, %v365_v53  ;;  %v368_v58 = vld [vmem:[%s696_s0 + $0x2c] sm:$0x2]   ;;  %v369_v59 = vld [vmem:[%s696_s0 + $0xc] sm:$0x1]   ;;  %s442_s20 = smov 56   ;;  %s444_s30 = smov 48  }
  0x12   :  { %v370_v60 = vld [vmem:[%s696_s0 + $0x2b] sm:$0x2]   ;;  %v194_v61 = vsel %vm5_vm0, %v368_v58, %v367_v57  ;;  %v371_v63 = vld [vmem:[%s696_s0 + $0xb] sm:$0x1]   ;;  %v373_v1 = vld [vmem:[%s696_s0 + $0xa] sm:$0x1]  }
  0x13   :  { %v204_v62 = vsel %vm5_vm0, %v370_v60, %v369_v59  ;;  %v372_v0 = vld [vmem:[%s696_s0 + $0x2a] sm:$0x2]   ;;  %v374_v2 = vld [vmem:[%s696_s0 + $0x29] sm:$0x2]   ;;  %v375_v5 = vld [vmem:[%s696_s0 + $0x9] sm:$0x1]  }
  0x14   :  { %95 = vrot.lane.b32.xlu0 %v94_v28, %s433_s4  ;;  %105 = vrot.lane.b32.xlu1 %v104_v29, %s434_s5  ;;  %v214_v3 = vsel %vm5_vm0, %v372_v0, %v371_v63  ;;  %v224_v4 = vsel %vm5_vm0, %v374_v2, %v373_v1  ;;  %v376_v6 = vld [vmem:[%s696_s0 + $0x28] sm:$0x2]   ;;  %v377_v7 = vld [vmem:[%s696_s0 + $0x8] sm:$0x1]   ;;  %s446_s11 = smov 40   ;;  %s448_s21 = smov 32  }
  0x15   :  { %v378_v8 = vld [vmem:[%s696_s0 + $0x27] sm:$0x2]   ;;  %v234_v9 = vsel %vm5_vm0, %v376_v6, %v375_v5  ;;  %v379_v11 = vld [vmem:[%s696_s0 + $0x7] sm:$0x1]   ;;  %v381_v13 = vld [vmem:[%s696_s0 + $0x6] sm:$0x1]  }
  0x16   :  { %v244_v10 = vsel %vm5_vm0, %v378_v8, %v377_v7  ;;  %v380_v12 = vld [vmem:[%s696_s0 + $0x26] sm:$0x2]   ;;  %v382_v14 = vld [vmem:[%s696_s0 + $0x25] sm:$0x2]   ;;  %v383_v17 = vld [vmem:[%s696_s0 + $0x5] sm:$0x1]  }
  0x17   :  { %v254_v15 = vsel %vm5_vm0, %v380_v12, %v379_v11  ;;  %v264_v16 = vsel %vm5_vm0, %v382_v14, %v381_v13  ;;  %v384_v18 = vld [vmem:[%s696_s0 + $0x24] sm:$0x2]   ;;  %v385_v19 = vld [vmem:[%s696_s0 + $0x4] sm:$0x1]   ;;  %s450_s2 = smov 24   ;;  %s452_s12 = smov 16  }
  0x18   :  { %115 = vrot.lane.b32.xlu0 %v114_v34, %s435_s14  ;;  %125 = vrot.lane.b32.xlu1 %v124_v35, %s436_s15  ;;  %v386_v20 = vld [vmem:[%s696_s0 + $0x23] sm:$0x2]   ;;  %v274_v21 = vsel %vm5_vm0, %v384_v18, %v383_v17  ;;  %v387_v23 = vld [vmem:[%s696_s0 + $0x3] sm:$0x1]   ;;  %s454_s17 = smov 8   ;;  %s455_s18 = smov 4  }
  0x19   :  { %v284_v22 = vsel %vm5_vm0, %v386_v20, %v385_v19  ;;  %v388_v24 = vld [vmem:[%s696_s0 + $0x22] sm:$0x2]   ;;  %v389_v25 = vld [vmem:[%s696_s0 + $0x2] sm:$0x1]   ;;  %v391_v29 = vld [vmem:[%s696_s0 + $0x1] sm:$0x1]  }
  0x1a   :  { %v390_v26 = vld [vmem:[%s696_s0 + $0x21] sm:$0x2]   ;;  %v294_v27 = vsel %vm5_vm0, %v388_v24, %v387_v23  ;;  %v392_v30 = vld [vmem:[%s696_s0 + $0x20] sm:$0x2]   ;;  %s453_s0 = smov 12   ;;  %vm37_vm4 = vcmask 982944  }
  0x1b   :  { %v304_v28 = vsel %vm5_vm0, %v390_v26, %v389_v25  ;;  %v314_v31 = vsel %vm5_vm0, %v392_v30, %v391_v29  ;;  %vm47_vm5 = vcmask 950144   ;;  %vm57_vm6 = vcmask 917344  }
  0x1c   :  { %135 = vrot.lane.b32.xlu0 %v134_v40, %s437_s24  ;;  %145 = vrot.lane.b32.xlu1 %v144_v41, %s438_s29  ;;  %s443_s29 = smov 52   ;;  %vm67_vm7 = vcmask 884544   ;;  %vm77_vm8 = vcmask 851744   ;;  %vm87_vm9 = vcmask 818944   ;;  %vm97_vm10 = vcmask 786144  }
  0x1d   :  { %vm107_vm11 = vcmask 753344   ;;  %vm117_vm12 = vcmask 720544   ;;  %vm127_vm13 = vcmask 687744   ;;  %vm137_vm14 = vcmask 654944  }
  0x1e   :  { %vm147_vm15 = vcmask 622144   ;;  %vm157_vm0 = vcmask 589344   ;;  %vm167_vm1 = vcmask 556544  }
  0x20   :  { %155 = vrot.lane.b32.xlu0 %v154_v48, %s439_s9  ;;  %165 = vrot.lane.b32.xlu1 %v164_v50, %s440_s10  ;;  %s445_s10 = smov 44  }
  0x24   :  { %175 = vrot.lane.b32.xlu0 %v174_v55, %s441_s19  ;;  %185 = vrot.lane.b32.xlu1 %v184_v56, %s442_s20  ;;  %s447_s20 = smov 36  }
  0x28   :  { %195 = vrot.lane.b32.xlu0 %v194_v61, %s443_s29  ;;  %205 = vrot.lane.b32.xlu1 %v204_v62, %s444_s30  ;;  %s449_s30 = smov 28  }
  0x2c   :  { %215 = vrot.lane.b32.xlu0 %v214_v3, %s445_s10  ;;  %225 = vrot.lane.b32.xlu1 %v224_v4, %s446_s11  ;;  %s451_s11 = smov 20  }
  0x30   :  { %235 = vrot.lane.b32.xlu0 %v234_v9, %s447_s20  ;;  %245 = vrot.lane.b32.xlu1 %v244_v10, %s448_s21 }
  0x34   :  { %255 = vrot.lane.b32.xlu0 %v254_v15, %s449_s30  ;;  %265 = vrot.lane.b32.xlu1 %v264_v16, %s450_s2 }
  0x38   :  { %275 = vrot.lane.b32.xlu0 %v274_v21, %s451_s11  ;;  %285 = vrot.lane.b32.xlu1 %v284_v22, %s452_s12 }
  0x3c   :  { %295 = vrot.lane.b32.xlu0 %v294_v27, %s453_s0  ;;  %305 = vrot.lane.b32.xlu1 %v304_v28, %s454_s17 }
  0x40   :  { %315 = vrot.lane.b32.xlu0 %v314_v31, %s455_s18 }
  0x76   :  { %v16_v32 = vpop.permute.xlu0 %15   ;;  %v36_v33 = vpop.permute.xlu1 %35  }
  0x77   :  { %18 = vst.msk [vmem:[#allocation0] ss:$8 sm:$0x3] %vm17_vm2, %v16_v32   ;;  %vm177_vm2 = vcmask 523744  }
  0x7a   :  { %v26_v34 = vpop.permute.xlu0 %25   ;;  %v46_v35 = vpop.permute.xlu1 %45  }
  0x7b   :  { %28 = vst.msk [vmem:[#allocation0] ss:$8 sm:$0x3] %vm27_vm3, %v26_v34   ;;  %vm187_vm3 = vcmask 490944  }
  0x7c   :  { %38 = vst.msk [vmem:[#allocation0] ss:$8 sm:$0x3] %vm37_vm4, %v36_v33   ;;  %vm197_vm4 = vcmask 458144  }
  0x7d   :  { %48 = vst.msk [vmem:[#allocation0] ss:$8 sm:$0x3] %vm47_vm5, %v46_v35   ;;  %vm207_vm5 = vcmask 425344  }
  0x7e   :  { %v56_v36 = vpop.permute.xlu0 %55   ;;  %v66_v37 = vpop.permute.xlu1 %65  }
  0x7f   :  { %58 = vst.msk [vmem:[#allocation0] ss:$8 sm:$0x3] %vm57_vm6, %v56_v36   ;;  %vm217_vm6 = vcmask 392544  }
  0x80   :  { %68 = vst.msk [vmem:[#allocation0] ss:$8 sm:$0x3] %vm67_vm7, %v66_v37   ;;  %vm227_vm7 = vcmask 359744  }
  0x82   :  { %v76_v38 = vpop.permute.xlu0 %75   ;;  %v86_v39 = vpop.permute.xlu1 %85  }
  0x83   :  { %78 = vst.msk [vmem:[#allocation0] ss:$8 sm:$0x3] %vm77_vm8, %v76_v38   ;;  %vm237_vm8 = vcmask 326944  }
  0x84   :  { %88 = vst.msk [vmem:[#allocation0] ss:$8 sm:$0x3] %vm87_vm9, %v86_v39   ;;  %vm247_vm9 = vcmask 294144  }
  0x86   :  { %v96_v40 = vpop.permute.xlu0 %95   ;;  %v106_v41 = vpop.permute.xlu1 %105  }
  0x87   :  { %98 = vst.msk [vmem:[#allocation0] ss:$8 sm:$0x3] %vm97_vm10, %v96_v40   ;;  %vm257_vm10 = vcmask 261344  }
  0x88   :  { %108 = vst.msk [vmem:[#allocation0] ss:$8 sm:$0x3] %vm107_vm11, %v106_v41   ;;  %vm267_vm11 = vcmask 228544  }
  0x8a   :  { %v116_v42 = vpop.permute.xlu0 %115   ;;  %v126_v43 = vpop.permute.xlu1 %125  }
  0x8b   :  { %118 = vst.msk [vmem:[#allocation0] ss:$8 sm:$0x3] %vm117_vm12, %v116_v42   ;;  %vm277_vm12 = vcmask 195744  }
  0x8c   :  { %128 = vst.msk [vmem:[#allocation0] ss:$8 sm:$0x3] %vm127_vm13, %v126_v43   ;;  %vm287_vm13 = vcmask 162944  }
  0x8e   :  { %v136_v44 = vpop.permute.xlu0 %135   ;;  %v146_v45 = vpop.permute.xlu1 %145  }
  0x8f   :  { %138 = vst.msk [vmem:[#allocation0] ss:$8 sm:$0x3] %vm137_vm14, %v136_v44   ;;  %vm297_vm14 = vcmask 130144  }
  0x90   :  { %148 = vst.msk [vmem:[#allocation0] ss:$8 sm:$0x3] %vm147_vm15, %v146_v45   ;;  %vm307_vm15 = vcmask 97344  }
  0x92   :  { %v156_v46 = vpop.permute.xlu0 %155   ;;  %v166_v47 = vpop.permute.xlu1 %165  }
  0x93   :  { %158 = vst.msk [vmem:[#allocation0] ss:$8 sm:$0x3] %vm157_vm0, %v156_v46   ;;  %vm317_vm0 = vcmask 64544  }
  0x94   :  { %168 = vst.msk [vmem:[#allocation0] ss:$8 sm:$0x3] %vm167_vm1, %v166_v47  }
  0x96   :  { %v176_v48 = vpop.permute.xlu0 %175   ;;  %v186_v49 = vpop.permute.xlu1 %185  }
  0x97   :  { %178 = vst.msk [vmem:[#allocation0] ss:$8 sm:$0x3] %vm177_vm2, %v176_v48  }
  0x98   :  { %188 = vst.msk [vmem:[#allocation0] ss:$8 sm:$0x3] %vm187_vm3, %v186_v49  }
  0x9a   :  { %v196_v50 = vpop.permute.xlu0 %195   ;;  %v206_v51 = vpop.permute.xlu1 %205  }
  0x9b   :  { %198 = vst.msk [vmem:[#allocation0] ss:$8 sm:$0x3] %vm197_vm4, %v196_v50  }
  0x9c   :  { %208 = vst.msk [vmem:[#allocation0] ss:$8 sm:$0x3] %vm207_vm5, %v206_v51  }
  0x9e   :  { %v216_v52 = vpop.permute.xlu0 %215   ;;  %v226_v53 = vpop.permute.xlu1 %225  }
  0x9f   :  { %218 = vst.msk [vmem:[#allocation0] ss:$8 sm:$0x3] %vm217_vm6, %v216_v52  }
  0xa0   :  { %228 = vst.msk [vmem:[#allocation0] ss:$8 sm:$0x3] %vm227_vm7, %v226_v53  }
  0xa2   :  { %v236_v54 = vpop.permute.xlu0 %235   ;;  %v246_v55 = vpop.permute.xlu1 %245  }
  0xa3   :  { %238 = vst.msk [vmem:[#allocation0] ss:$8 sm:$0x3] %vm237_vm8, %v236_v54  }
  0xa4   :  { %248 = vst.msk [vmem:[#allocation0] ss:$8 sm:$0x3] %vm247_vm9, %v246_v55  }
  0xa6   :  { %v256_v56 = vpop.permute.xlu0 %255   ;;  %v266_v57 = vpop.permute.xlu1 %265  }
  0xa7   :  { %258 = vst.msk [vmem:[#allocation0] ss:$8 sm:$0x3] %vm257_vm10, %v256_v56  }
  0xa8   :  { %268 = vst.msk [vmem:[#allocation0] ss:$8 sm:$0x3] %vm267_vm11, %v266_v57  }
  0xaa   :  { %v276_v58 = vpop.permute.xlu0 %275   ;;  %v286_v59 = vpop.permute.xlu1 %285  }
  0xab   :  { %278 = vst.msk [vmem:[#allocation0] ss:$8 sm:$0x3] %vm277_vm12, %v276_v58  }
  0xac   :  { %288 = vst.msk [vmem:[#allocation0] ss:$8 sm:$0x3] %vm287_vm13, %v286_v59  }
  0xae   :  { %v296_v60 = vpop.permute.xlu0 %295   ;;  %v306_v61 = vpop.permute.xlu1 %305  }
  0xaf   :  { %298 = vst.msk [vmem:[#allocation0] ss:$8 sm:$0x3] %vm297_vm14, %v296_v60  }
  0xb0   :  { %308 = vst.msk [vmem:[#allocation0] ss:$8 sm:$0x3] %vm307_vm15, %v306_v61  }
  0xb2   :  { %v316_v62 = vpop.permute.xlu0 %315  }
  0xb3   :  { %318 = vst.msk [vmem:[#allocation0] ss:$8 sm:$0x3] %vm317_vm0, %v316_v62  }
  0xba   :  { %v322_v63 = vld [vmem:[#allocation0] sm:$0x1]  ;;  %v326_v0 = vld [vmem:[#allocation0 + $0x8] sm:$0x1] }
  0xbb   :  { %324 = vst [vmem:[%s697_s1] sm:$0x1] %v322_v63  ;;  %393 = vst [vmem:[%s697_s1 + $0x1] sm:$0x1] %v326_v0 }

// kernel: linear_net_forward.1
= control target key start
LH: loop header
LB: loop body
LE: loop exit
PB: predicated region body
PF: predicated region fallthrough
CT: control target
= control target key end

     0   :  { %v169_v3 = vmov 0.0   ;;  %v49_v50 = vlaneseq  ;;  %s298_s0 = inlined_call_operand.vmem [shape: f32[128,256], index: 0, kind: input, shape index: {}]   ;;  %s299_s2 = inlined_call_operand.vmem [shape: f32[8,128], index: 2, kind: input, shape index: {}]   ;;  %s300_s1 = inlined_call_operand.vmem [shape: f32[1,256], index: 1, kind: input, shape index: {}]   ;;  %s301_s3 = inlined_call_operand.vmem [shape: f32[8,256], index: 3, kind: output, shape index: {}]  }
   0x1   :  { %v16_v0 = vld [vmem:[%s298_s0 + $0x8] sm:$0xff]  ;;  %v18_v1 = vld [vmem:[%s298_s0 + $0x18] sm:$0xff]  ;;  %v15_v2 = vld [vmem:[%s298_s0] sm:$0xff]  ;;  %123 = vmatprep.mubr.f32.mxu0 %v169_v3 }
   0x2   :  { %v136_v4 = vpack.c.bf16 %v18_v1, %v16_v0  ;;  %v17_v5 = vld [vmem:[%s298_s0 + $0x10] sm:$0xff]  ;;  %v20_v6 = vld [vmem:[%s298_s0 + $0x28] sm:$0xff]  ;;  %v22_v7 = vld [vmem:[%s298_s0 + $0x38] sm:$0xff]  ;;  %v50_v51 = vshrl.u32 %v49_v50, 7 }
   0x3   :  { %v138_v8 = vpack.c.bf16 %v17_v5, %v15_v2  ;;  %v140_v9 = vpack.c.bf16 %v22_v7, %v20_v6  ;;  %v19_v10 = vld [vmem:[%s298_s0 + $0x20] sm:$0xff]  ;;  %v21_v11 = vld [vmem:[%s298_s0 + $0x30] sm:$0xff]  ;;  %v24_v12 = vld [vmem:[%s298_s0 + $0x48] sm:$0xff] }
   0x4   :  { %137 = vmatprep.subr.bf16.mxu0 %v136_v4  ;;  %v26_v13 = vld [vmem:[%s298_s0 + $0x58] sm:$0xff]  ;;  %v142_v14 = vpack.c.bf16 %v21_v11, %v19_v10  ;;  %v23_v16 = vld [vmem:[%s298_s0 + $0x40] sm:$0xff]  ;;  %v25_v17 = vld [vmem:[%s298_s0 + $0x50] sm:$0xff]  ;;  %v51_v52 = vsub.s32 0, %v50_v51  ;;  %v55_v54 = vsub.s32 1, %v50_v51 }
   0x5   :  { %139 = vmatpush1.bf16.msra.mxu0 %v138_v8  ;;  %v144_v15 = vpack.c.bf16 %v26_v13, %v24_v12  ;;  %v28_v18 = vld [vmem:[%s298_s0 + $0x68] sm:$0xff]  ;;  %v30_v19 = vld [vmem:[%s298_s0 + $0x78] sm:$0xff]  ;;  %v146_v20 = vpack.c.bf16 %v25_v17, %v23_v16  ;;  %v27_v22 = vld [vmem:[%s298_s0 + $0x60] sm:$0xff] }
   0x6   :  { %141 = vmatprep.subr.bf16.mxu0 %v140_v9  ;;  %v148_v21 = vpack.c.bf16 %v30_v19, %v28_v18  ;;  %v29_v23 = vld [vmem:[%s298_s0 + $0x70] sm:$0xff]  ;;  %v32_v24 = vld [vmem:[%s298_s0 + $0x88] sm:$0xff]  ;;  %v34_v25 = vld [vmem:[%s298_s0 + $0x98] sm:$0xff] }
   0x7   :  { %v150_v26 = vpack.c.bf16 %v29_v23, %v27_v22  ;;  %v152_v27 = vpack.c.bf16 %v34_v25, %v32_v24  ;;  %v31_v28 = vld [vmem:[%s298_s0 + $0x80] sm:$0xff]  ;;  %v33_v29 = vld [vmem:[%s298_s0 + $0x90] sm:$0xff]  ;;  %v36_v30 = vld [vmem:[%s298_s0 + $0xa8] sm:$0xff] }
   0x8   :  { %v38_v31 = vld [vmem:[%s298_s0 + $0xb8] sm:$0xff]  ;;  %v154_v32 = vpack.c.bf16 %v33_v29, %v31_v28  ;;  %v35_v34 = vld [vmem:[%s298_s0 + $0xa0] sm:$0xff]  ;;  %v37_v35 = vld [vmem:[%s298_s0 + $0xb0] sm:$0xff] }
   0x9   :  { %143 = vmatpush1.bf16.msra.mxu0 %v142_v14  ;;  %v156_v33 = vpack.c.bf16 %v38_v31, %v36_v30  ;;  %v40_v36 = vld [vmem:[%s298_s0 + $0xc8] sm:$0xff]  ;;  %v42_v37 = vld [vmem:[%s298_s0 + $0xd8] sm:$0xff]  ;;  %v158_v38 = vpack.c.bf16 %v37_v35, %v35_v34  ;;  %v39_v40 = vld [vmem:[%s298_s0 + $0xc0] sm:$0xff] }
   0xa   :  { %145 = vmatprep.subr.bf16.mxu0 %v144_v15  ;;  %v160_v39 = vpack.c.bf16 %v42_v37, %v40_v36  ;;  %v41_v41 = vld [vmem:[%s298_s0 + $0xd0] sm:$0xff]  ;;  %v44_v42 = vld [vmem:[%s298_s0 + $0xe8] sm:$0xff]  ;;  %v46_v43 = vld [vmem:[%s298_s0 + $0xf8] sm:$0xff] }
   0xb   :  { %v162_v44 = vpack.c.bf16 %v41_v41, %v39_v40  ;;  %v164_v45 = vpack.c.bf16 %v46_v43, %v44_v42  ;;  %v43_v46 = vld [vmem:[%s298_s0 + $0xe0] sm:$0xff]  ;;  %v45_v47 = vld [vmem:[%s298_s0 + $0xf0] sm:$0xff] }
   0xc   :  { %v166_v48 = vpack.c.bf16 %v45_v47, %v43_v46  ;;  %v14_v49 = vld [vmem:[%s299_s2] sm:$0xff] }
   0xd   :  { %147 = vmatpush1.bf16.msra.mxu0 %v146_v20  ;;  %v47_v53 = vld [vmem:[%s300_s1] sm:$0x3] }
   0xe   :  { %149 = vmatprep.subr.bf16.mxu0 %v148_v21  ;;  %v52_v55 = vrot.slane %v47_v53, %v51_v52  ;;  %v56_v56 = vrot.slane %v47_v53, %v55_v54 }
  0x11   :  { %151 = vmatpush1.bf16.msra.mxu0 %v150_v26 }
  0x12   :  { %153 = vmatprep.subr.bf16.mxu0 %v152_v27 }
  0x15   :  { %155 = vmatpush1.bf16.msra.mxu0 %v154_v32 }
  0x16   :  { %157 = vmatprep.subr.bf16.mxu0 %v156_v33 }
  0x19   :  { %159 = vmatpush1.bf16.msra.mxu0 %v158_v38 }
  0x1a   :  { %161 = vmatprep.subr.bf16.mxu0 %v160_v39 }
  0x1d   :  { %163 = vmatpush1.bf16.msra.mxu0 %v162_v44 }
  0x1e   :  { %165 = vmatprep.subr.bf16.mxu0 %v164_v45 }
  0x21   :  { %167 = vmatpush1.bf16.msra.mxu0 %v166_v48 }
  0x24   :  { %124 = vmatmul.mubr.f32.vlgmr.msra.gmra.mrb[0].mxu0 %v14_v49 }
  0xf7   :  { %v125_v57 = vpop.f32.mrb[0].mxu0 }
  0xf8   :  { %v126_v58 = vadd.f32 %v125_v57, %v52_v55  ;;  %v127_v59 = vpop.f32.mrb[1].mxu0 }
  0xf9   :  { %v128_v60 = vadd.f32 %v127_v59, %v56_v56 }
  0xfa   :  { %130 = vst [vmem:[%s301_s3] sm:$0xff] %v126_v58 }
  0xfb   :  { %131 = vst [vmem:[%s301_s3 + $0x8] sm:$0xff] %v128_v60 }

</bundles_post_ra>
